<compile_context>
chip_gen: v5e
topology: v5e:2x2
jax: 0.10.0
libtpu: 0.0.40
codegen_flags: <defaults>
</compile_context>

<pallas_src>
import functools

import jax
import jax.numpy as jnp
from jax.experimental import pallas as pl
from jax.experimental.pallas import tpu as pltpu

_LANE = 128
_SUBLANE = 8


def _round_up(x, m):
    return ((x + m - 1) // m) * m


# ----------------------------------------------------------------------------
# Kernel
# ----------------------------------------------------------------------------
def _attention_kernel(out_ref, ctx_ref, w_ref, b_ref, *out_refs, lk_valid,
                      compute_dtype, emit_attn):
    if emit_attn:
        y_ref, attn_ref = out_refs
    else:
        (y_ref,) = out_refs

    o = out_ref[...]                       # (bt, qt, Dp)
    c = ctx_ref[...]                       # (bt, Lk_pad, Dp)
    bt, qt, d = o.shape
    lk_pad = c.shape[1]

    oc = o.astype(compute_dtype)
    cc = c.astype(compute_dtype)

    # scores = output @ context^T as a batched contraction over D
    # (MXU consumes the context tile directly; no XLU transpose).
    scores = jnp.einsum("bqd,bkd->bqk", oc, cc,
                        preferred_element_type=jnp.float32)   # (bt, qt, Lk_pad)

    if lk_valid < lk_pad:
        # Key columns added only for a lane-dense attn store -> mask to -inf.
        # Small (1,1,Lk_pad) iota broadcast, not a full-tensor iota.
        col = jax.lax.broadcasted_iota(jnp.int32, (1, 1, lk_pad), 2)
        scores = jnp.where(col < lk_valid, scores, -jnp.inf)

    # Numerically-stable softmax over the key axis.
    m = jnp.max(scores, axis=-1, keepdims=True)
    e = jnp.exp(scores - m)
    s = jnp.sum(e, axis=-1, keepdims=True)
    r = pl.reciprocal(s, approx=True)      # EUP vrcp (otherwise idle slot)
    r = r * (2.0 - s * r)                  # one Newton step -> f32 accuracy

    if emit_attn:
        attn = e * r
        attn_ref[...] = attn.astype(attn_ref.dtype)
        mix = jnp.einsum("bqk,bkd->bqd", attn.astype(compute_dtype), cc,
                         preferred_element_type=jnp.float32)   # (bt, qt, Dp)
    else:
        # No attn writeback requested: normalize AFTER the second matmul so
        # the per-element scaling is over Lq*D instead of Lq*Lk_pad and the
        # largest HBM store stream disappears entirely.
        mix = jnp.einsum("bqk,bkd->bqd", e.astype(compute_dtype), cc,
                         preferred_element_type=jnp.float32) * r

    # tanh(concat(mix, output) @ W^T + b) == tanh(mix @ W1 + output @ W2 + b).
    # Fold (bt, qt) into M; qt%8==0 and Dp%128==0 make the reshape a no-op.
    w = w_ref[...].astype(compute_dtype)   # (2*Dp, Dp) = [W1; W2]
    mix2 = mix.reshape(bt * qt, d).astype(compute_dtype)
    o2 = oc.reshape(bt * qt, d)
    pre = (jnp.dot(mix2, w[:d, :], preferred_element_type=jnp.float32)
           + jnp.dot(o2, w[d:, :], preferred_element_type=jnp.float32)
           + b_ref[...].astype(jnp.float32))
    y_ref[...] = jnp.tanh(pre).reshape(bt, qt, d).astype(y_ref.dtype)


# ----------------------------------------------------------------------------
# Hardware / capability probes (each evaluated once, cached)
# ----------------------------------------------------------------------------
@functools.lru_cache(maxsize=None)
def _vmem_capacity_bytes():
    try:
        info = pltpu.get_tpu_info()
        v = getattr(info, "vmem_capacity_bytes", None)
        if v:
            return int(v)
    except Exception:
        pass
    return 64 * 1024 * 1024   # conservative fallback (v7x per-TC VMEM)


@functools.lru_cache(maxsize=None)
def _single_buffer_supported():
    """Probe pl.Buffered(1) (single-buffered grid-invariant operands) once,
    on a tiny kernel, instead of try/except around the real call."""
    if not hasattr(pl, "Buffered"):
        return False
    try:
        def _k(x_ref, o_ref):
            o_ref[...] = x_ref[...] + 1.0
        fn = pl.pallas_call(
            _k,
            out_shape=jax.ShapeDtypeStruct((8, 128), jnp.float32),
            grid_spec=pltpu.PrefetchScalarGridSpec(
                num_scalar_prefetch=0,
                grid=(1,),
                in_specs=[pl.BlockSpec((8, 128), lambda i: (0, 0),
                                       pipeline_mode=pl.Buffered(1))],
                out_specs=pl.BlockSpec((8, 128), lambda i: (0, 0)),
            ),
        )
        jax.block_until_ready(fn(jnp.zeros((8, 128), jnp.float32)))
        return True
    except Exception:
        return False


# ----------------------------------------------------------------------------
# Tiling / VMEM budgeting
# ----------------------------------------------------------------------------
def _pick_tiles(B, Lq_pad, Lk_pad, Dp, itemsize, emit_attn, attn_itemsize):
    """Choose (batch tile, query tile, vmem_limit) based on the chip's VMEM.

    v5e/v6e (128 MiB physical): ~20 MiB per-step blocks, 64 MiB scoped limit.
    v7x (64 MiB physical, 2 TCs): ~7 MiB blocks, ~40 MiB limit, >=2 grid steps.
    """
    phys = _vmem_capacity_bytes()
    small_vmem = phys <= 96 * 1024 * 1024          # v7x-class VMEM
    max_block_bytes = (7 if small_vmem else 20) << 20
    base_limit = (40 if small_vmem else 64) << 20
    w_bytes = itemsize * (2 * Dp * Dp + Dp)        # fused weight + bias

    def io_bytes(bt, qt):
        b = itemsize * (2 * bt * qt * Dp + bt * Lk_pad * Dp)
        if emit_attn:
            b += attn_itemsize * bt * qt * Lk_pad
        return b

    def scores_bytes(bt, qt):
        return 4 * bt * qt * Lk_pad                # f32 scores/e live values

    def block_bytes(bt, qt):
        return io_bytes(bt, qt) + scores_bytes(bt, qt)

    qt = Lq_pad
    bt = max(1, min(B, -(-256 // qt)))             # target >=256 rows of M
    while bt > 1 and block_bytes(bt, qt) > max_block_bytes:
        bt -= 1
    if block_bytes(bt, qt) > max_block_bytes:
        # Long-sequence fallback: tile the query axis (largest divisor of
        # Lq_pad that is a multiple of 8 and fits the block budget).
        bt = 1
        for cand in range(Lq_pad - _SUBLANE, 0, -_SUBLANE):
            if Lq_pad % cand == 0 and block_bytes(1, cand) <= max_block_bytes:
                qt = cand
                break
        else:
            qt = _SUBLANE                          # best effort

    if small_vmem:
        # v7x has 2 TensorCores; a single grid step leaves one idle.
        total_steps = (-(-B // bt)) * (Lq_pad // qt)
        if total_steps < 2:
            if bt > 1:
                bt = bt // 2
            else:
                for cand in range(qt - _SUBLANE, 0, -_SUBLANE):
                    if Lq_pad % cand == 0:
                        qt = cand
                        break

    # Honest scoped-VMEM request: double-buffered I/O blocks + (possibly
    # double-buffered) weights + headroom, capped below physical VMEM.
    need = 2 * io_bytes(bt, qt) + scores_bytes(bt, qt) + 2 * w_bytes + (4 << 20)
    vmem_limit = int(min(max(base_limit, need),
                         max(phys - (8 << 20), 32 << 20)))
    return bt, qt, vmem_limit


# ----------------------------------------------------------------------------
# pallas_call builder (cached per static signature)
# ----------------------------------------------------------------------------
@functools.lru_cache(maxsize=None)
def _build_call(B_pad, Lq_pad, Lk, Lk_pad, Dp, bt, qt, out_dtype_name,
                attn_dtype_name, compute_dtype_name, emit_attn,
                single_buffer, vmem_limit):
    out_dtype = jnp.dtype(out_dtype_name)
    compute_dtype = jnp.dtype(compute_dtype_name)

    # Single-buffer the grid-invariant weight/bias operands when supported:
    # their index_map is constant, so double-buffering only wastes VMEM
    # (matters most on v7x's 64 MiB VMEM at realistic D).
    wkw = {"pipeline_mode": pl.Buffered(1)} if single_buffer else {}

    in_specs = [
        pl.BlockSpec((bt, qt, Dp), lambda b, q: (b, q, 0)),       # decoder out
        pl.BlockSpec((bt, Lk_pad, Dp), lambda b, q: (b, 0, 0)),   # context
        pl.BlockSpec((2 * Dp, Dp), lambda b, q: (0, 0), **wkw),   # [W1; W2]
        pl.BlockSpec((1, Dp), lambda b, q: (0, 0), **wkw),        # bias
    ]
    out_specs = [pl.BlockSpec((bt, qt, Dp), lambda b, q: (b, q, 0))]
    out_shape = [jax.ShapeDtypeStruct((B_pad, Lq_pad, Dp), out_dtype)]
    if emit_attn:
        attn_dtype = jnp.dtype(attn_dtype_name)
        out_specs.append(pl.BlockSpec((bt, qt, Lk_pad), lambda b, q: (b, q, 0)))
        out_shape.append(
            jax.ShapeDtypeStruct((B_pad, Lq_pad, Lk_pad), attn_dtype))

    kernel = functools.partial(_attention_kernel, lk_valid=Lk,
                               compute_dtype=compute_dtype,
                               emit_attn=emit_attn)
    return pl.pallas_call(
        kernel,
        out_shape=tuple(out_shape) if emit_attn else out_shape[0],
        grid_spec=pltpu.PrefetchScalarGridSpec(
            num_scalar_prefetch=0,
            grid=(B_pad // bt, Lq_pad // qt),
            in_specs=in_specs,
            out_specs=out_specs if emit_attn else out_specs[0],
        ),
        compiler_params=pltpu.CompilerParams(
            dimension_semantics=("parallel", "parallel"),
            vmem_limit_bytes=int(vmem_limit),
        ),
    )


# ----------------------------------------------------------------------------
# Public wrapper
# ----------------------------------------------------------------------------
def attention_forward(output, context, weight, bias, *, matmul_dtype=None,
                      return_attn=True, attn_dtype=None):
    """output: (B, Lq, D); context: (B, Lk, D);
       weight: (D, 2D) torch.nn.Linear weight; bias: (D,).

       matmul_dtype: optionally jnp.bfloat16 for v6e/v7x MXU throughput
         (f32 accumulation and f32 softmax are kept either way; the default
         keeps the input dtype so f32 inputs match the reference to 1e-5).
       return_attn:  False drops the (B, Lq, Lk) attention writeback — the
         largest HBM stream when Lk >> D — and returns (y, None).
       attn_dtype:   storage dtype for the attn output (e.g. jnp.bfloat16
         to halve its HBM traffic); defaults to the input dtype."""
    B, Lq, D = output.shape
    Bc, Lk, Dc = context.shape
    assert Bc == B and Dc == D

    out_dtype = jnp.dtype(output.dtype)
    compute_dtype = out_dtype if matmul_dtype is None else jnp.dtype(matmul_dtype)
    attn_dt = out_dtype if attn_dtype is None else jnp.dtype(attn_dtype)

    # Pad to lane/sublane multiples: lane-dense stores for y and attn, and
    # layout-free (bt*qt, Dp) folds before the fused linear.
    Dp = _round_up(D, _LANE)
    Lq_pad = _round_up(Lq, _SUBLANE)
    Lk_pad = _round_up(Lk, _LANE)

    bt, qt, vmem_limit = _pick_tiles(B, Lq_pad, Lk_pad, Dp,
                                     out_dtype.itemsize, bool(return_attn),
                                     attn_dt.itemsize)
    B_pad = _round_up(B, bt)   # pad ragged batches instead of shrinking bt

    out_p = output
    if (B_pad, Lq_pad, Dp) != (B, Lq, D):
        out_p = jnp.pad(output,
                        ((0, B_pad - B), (0, Lq_pad - Lq), (0, Dp - D)))
    ctx_p = context
    if (B_pad, Lk_pad, Dp) != (B, Lk, D):
        ctx_p = jnp.pad(context,
                        ((0, B_pad - B), (0, Lk_pad - Lk), (0, Dp - D)))

    # y = x @ W^T + b with x = [mix, output]  =>  W^T = [W1; W2], shape (2D, D);
    # zero-pad into (2*Dp, Dp) so padded feature columns stay exactly zero.
    w_all = weight.T
    if Dp != D:
        wp = jnp.zeros((2 * Dp, Dp), w_all.dtype)
        wp = wp.at[:D, :D].set(w_all[:D])
        wp = wp.at[Dp:Dp + D, :D].set(w_all[D:])
        bp = jnp.pad(bias.reshape(1, D), ((0, 0), (0, Dp - D)))
    else:
        wp = w_all
        bp = bias.reshape(1, D)

    call = _build_call(B_pad, Lq_pad, Lk, Lk_pad, Dp, bt, qt,
                       out_dtype.name, attn_dt.name,
                       jnp.dtype(compute_dtype).name, bool(return_attn),
                       _single_buffer_supported(), int(vmem_limit))
    res = call(out_p, ctx_p, wp, bp)

    if return_attn:
        y_p, attn_p = res
        return y_p[:B, :Lq, :D], attn_p[:B, :Lq, :Lk]
    return res[:B, :Lq, :D], None


def _reference(output, context, weight, bias):
    scores = jnp.einsum("bqd,bkd->bqk", output, context)
    attn = jax.nn.softmax(scores, axis=-1)
    mix = jnp.einsum("bqk,bkd->bqd", attn, context)
    combined = jnp.concatenate([mix, output], axis=-1)
    y = jnp.tanh(combined @ weight.T + bias)
    return y, attn


if __name__ == "__main__":
    # TODO(synk): optional set_mask() (-inf masking of caller-given indices) is
    # not exercised; the module default mask=None is what this kernel covers.
    B, Lq, Lk, D = 2, 8, 8, 32

    key = jax.random.PRNGKey(0)
    k1, k2, k3, k4 = jax.random.split(key, 4)
    output = jax.random.normal(k1, (B, Lq, D), dtype=jnp.float32)
    context = jax.random.normal(k2, (B, Lk, D), dtype=jnp.float32)
    # Deterministic Linear(2D -> D) params (torch-style uniform init bound).
    bound = 1.0 / jnp.sqrt(2.0 * D)
    weight = jax.random.uniform(k3, (D, 2 * D), minval=-bound, maxval=bound,
                                dtype=jnp.float32)
    bias = jax.random.uniform(k4, (D,), minval=-bound, maxval=bound,
                              dtype=jnp.float32)

    y_ref, attn_ref = _reference(output, context, weight, bias)

    # Default path: full module semantics (y, attn), exact-dtype matmuls.
    y, attn = attention_forward(output, context, weight, bias)
    jax.block_until_ready((y, attn))
    assert jnp.allclose(y, y_ref, atol=1e-5, rtol=1e-5), \
        float(jnp.max(jnp.abs(y - y_ref)))
    assert jnp.allclose(attn, attn_ref, atol=1e-5, rtol=1e-5), \
        float(jnp.max(jnp.abs(attn - attn_ref)))

    # Fast path: attn writeback dropped (normalization folded after mix).
    y2, attn2 = attention_forward(output, context, weight, bias,
                                  return_attn=False)
    jax.block_until_ready(y2)
    assert attn2 is None
    assert jnp.allclose(y2, y_ref, atol=1e-5, rtol=1e-5), \
        float(jnp.max(jnp.abs(y2 - y_ref)))

    print("KERNEL_OK")
</pallas_src>

<mosaic_0001>
module attributes {stable_mosaic.version = 11 : i64} {
  func.func @_k(%arg0: i32, %arg1: memref<8x128xf32, #tpu.memory_space<vmem>>, %arg2: memref<8x128xf32, #tpu.memory_space<vmem>>) attributes {dimension_semantics = [#tpu.dimension_semantics<arbitrary>], iteration_bounds = array<i64: 1>, scalar_prefetch = 0 : i64, scratch_operands = 0 : i64, tpu.core_type = #tpu.core_type<tc>, window_params = [{pipeline_mode = #tpu.pipeline_mode<synchronous>, transform_indices = @transform_0, window_bounds = array<i64: 8, 128>}, {pipeline_mode = #tpu.pipeline_mode<synchronous>, transform_indices = @transform_1, window_bounds = array<i64: 8, 128>}]} {
    %c0 = arith.constant 0 : index
    %c0_0 = arith.constant 0 : index
    %0 = vector.load %arg1[%c0, %c0_0] : memref<8x128xf32, #tpu.memory_space<vmem>>, vector<8x128xf32>
    %cst = arith.constant 1.000000e+00 : f32
    %1 = vector.broadcast %cst : f32 to vector<8x128xf32>
    %2 = arith.addf %0, %1 : vector<8x128xf32>
    %c0_1 = arith.constant 0 : index
    %c0_2 = arith.constant 0 : index
    %3 = vector.load %arg2[%c0_1, %c0_2] : memref<8x128xf32, #tpu.memory_space<vmem>>, vector<8x128xf32>
    tpu.vector_store %arg2[%c0_1, %c0_2], %2 {strides = array<i32>} : memref<8x128xf32, #tpu.memory_space<vmem>>, vector<8x128xf32>,
    return
  }
  func.func @transform_0(%arg0: i32) -> (i32, i32) {
    %c0_i32 = arith.constant 0 : i32
    %c0_i32_0 = arith.constant 0 : i32
    %c0_i32_1 = arith.constant 0 : i32
    return %c0_i32, %c0_i32_0 : i32, i32
  }
  func.func @transform_1(%arg0: i32) -> (i32, i32) {
    %c0_i32 = arith.constant 0 : i32
    %c0_i32_0 = arith.constant 0 : i32
    %c0_i32_1 = arith.constant 0 : i32
    return %c0_i32, %c0_i32_0 : i32, i32
  }
}

module attributes {stable_mosaic.version = 11 : i64} {
  func.func @_attention_kernel(%arg0: i32, %arg1: i32, %arg2: memref<1x8x128xf32, #tpu.memory_space<vmem>>, %arg3: memref<1x128x128xf32, #tpu.memory_space<vmem>>, %arg4: memref<256x128xf32, #tpu.memory_space<vmem>>, %arg5: memref<1x128xf32, #tpu.memory_space<vmem>>, %arg6: memref<1x8x128xf32, #tpu.memory_space<vmem>>, %arg7: memref<1x8x128xf32, #tpu.memory_space<vmem>>) attributes {dimension_semantics = [#tpu.dimension_semantics<parallel>, #tpu.dimension_semantics<parallel>], iteration_bounds = array<i64: 2, 1>, scalar_prefetch = 0 : i64, scratch_operands = 0 : i64, tpu.core_type = #tpu.core_type<tc>, window_params = [{transform_indices = @transform_0, window_bounds = array<i64: 1, 8, 128>}, {transform_indices = @transform_1, window_bounds = array<i64: 1, 128, 128>}, {pipeline_mode = #tpu.pipeline_mode<synchronous>, transform_indices = @transform_2, window_bounds = array<i64: 256, 128>}, {pipeline_mode = #tpu.pipeline_mode<synchronous>, transform_indices = @transform_3, window_bounds = array<i64: 1, 128>}, {transform_indices = @transform_4, window_bounds = array<i64: 1, 8, 128>}, {transform_indices = @transform_5, window_bounds = array<i64: 1, 8, 128>}]} {
    %c0 = arith.constant 0 : index
    %c0_0 = arith.constant 0 : index
    %c0_1 = arith.constant 0 : index
    %0 = vector.load %arg2[%c0, %c0_0, %c0_1] : memref<1x8x128xf32, #tpu.memory_space<vmem>>, vector<1x8x128xf32>
    %c0_2 = arith.constant 0 : index
    %c0_3 = arith.constant 0 : index
    %c0_4 = arith.constant 0 : index
    %1 = vector.load %arg3[%c0_2, %c0_3, %c0_4] : memref<1x128x128xf32, #tpu.memory_space<vmem>>, vector<1x128x128xf32>
    "tpu.trace_start"() <{level = 10 : i32, message = "bqd,bkd->bqk"}> : () -> ()
    %cst = arith.constant dense<0.000000e+00> : vector<1x8x128xf32>
    %2 = tpu.matmul %0, %1, %cst {dimension_numbers = #tpu.dot_dimension_numbers<[2], [2], [1], [1], [0, 0, 0, 1, 1, 1], [0], [0]>} : vector<1x8x128xf32>, vector<1x128x128xf32>, vector<1x8x128xf32> -> vector<1x8x128xf32>
    "tpu.trace_stop"() : () -> ()
    %3 = tpu.iota {dimensions = array<i32: 2>} : vector<1x1x128xi32>
    %c8_i32 = arith.constant 8 : i32
    %4 = vector.broadcast %c8_i32 : i32 to vector<1x1x128xi32>
    %5 = arith.cmpi slt, %3, %4 : vector<1x1x128xi32>
    %cst_5 = arith.constant 0xFF800000 : f32
    %6 = vector.shape_cast %5 : vector<1x1x128xi1> to vector<1x1x128xi1>
    %7 = vector.broadcast %6 : vector<1x1x128xi1> to vector<1x8x128xi1>
    %8 = vector.broadcast %cst_5 : f32 to vector<1x8x128xf32>
    %9 = arith.select %7, %2, %8 : vector<1x8x128xi1>, vector<1x8x128xf32>
    %cst_6 = arith.constant dense<0xFF800000> : vector<1x8xf32>
    %10 = vector.multi_reduction <maximumf>, %9, %cst_6 [2] : vector<1x8x128xf32> to vector<1x8xf32>
    %11 = vector.shape_cast %10 : vector<1x8xf32> to vector<1x8x1xf32>
    %12 = vector.broadcast %11 : vector<1x8x1xf32> to vector<1x8x128xf32>
    %13 = arith.subf %9, %12 : vector<1x8x128xf32>
    %14 = math.exp %13 : vector<1x8x128xf32>
    %cst_7 = arith.constant dense<0.000000e+00> : vector<1x8xf32>
    %15 = vector.multi_reduction <add>, %14, %cst_7 [2] : vector<1x8x128xf32> to vector<1x8xf32>
    %16 = vector.shape_cast %15 : vector<1x8xf32> to vector<1x8x1xf32>
    %17 = tpu.reciprocal %16 {approx = true} : vector<1x8x1xf32> -> vector<1x8x1xf32>
    %18 = arith.mulf %16, %17 : vector<1x8x1xf32>
    %cst_8 = arith.constant 2.000000e+00 : f32
    %19 = vector.broadcast %cst_8 : f32 to vector<1x8x1xf32>
    %20 = arith.subf %19, %18 : vector<1x8x1xf32>
    %21 = arith.mulf %17, %20 : vector<1x8x1xf32>
    %22 = vector.broadcast %21 : vector<1x8x1xf32> to vector<1x8x128xf32>
    %23 = arith.mulf %14, %22 : vector<1x8x128xf32>
    %c0_9 = arith.constant 0 : index
    %c0_10 = arith.constant 0 : index
    %c0_11 = arith.constant 0 : index
    %24 = vector.load %arg7[%c0_9, %c0_10, %c0_11] : memref<1x8x128xf32, #tpu.memory_space<vmem>>, vector<1x8x128xf32>
    tpu.vector_store %arg7[%c0_9, %c0_10, %c0_11], %23 {strides = array<i32>} : memref<1x8x128xf32, #tpu.memory_space<vmem>>, vector<1x8x128xf32>,
    "tpu.trace_start"() <{level = 10 : i32, message = "bqk,bkd->bqd"}> : () -> ()
    %cst_12 = arith.constant dense<0.000000e+00> : vector<1x8x128xf32>
    %25 = tpu.matmul %23, %1, %cst_12 {dimension_numbers = #tpu.dot_dimension_numbers<[2], [1], [1], [2], [0, 0, 0, 1, 1, 2], [0], [0]>} : vector<1x8x128xf32>, vector<1x128x128xf32>, vector<1x8x128xf32> -> vector<1x8x128xf32>
    "tpu.trace_stop"() : () -> ()
    %c0_13 = arith.constant 0 : index
    %c0_14 = arith.constant 0 : index
    %26 = vector.load %arg4[%c0_13, %c0_14] : memref<256x128xf32, #tpu.memory_space<vmem>>, vector<256x128xf32>
    %27 = vector.shape_cast %25 : vector<1x8x128xf32> to vector<8x128xf32>
    %28 = vector.shape_cast %0 : vector<1x8x128xf32> to vector<8x128xf32>
    %29 = vector.extract_strided_slice %26 {offsets = [0, 0], sizes = [128, 128], strides = [1, 1]} : vector<256x128xf32> to vector<128x128xf32>
    %cst_15 = arith.constant dense<0.000000e+00> : vector<8x128xf32>
    %30 = tpu.matmul %27, %29, %cst_15 {dimension_numbers = #tpu.dot_dimension_numbers<[1], [0], [0], [1], [0, 0, 1, 1], [], []>} : vector<8x128xf32>, vector<128x128xf32>, vector<8x128xf32> -> vector<8x128xf32>
    %31 = vector.extract_strided_slice %26 {offsets = [128, 0], sizes = [128, 128], strides = [1, 1]} : vector<256x128xf32> to vector<128x128xf32>
    %cst_16 = arith.constant dense<0.000000e+00> : vector<8x128xf32>
    %32 = tpu.matmul %28, %31, %cst_16 {dimension_numbers = #tpu.dot_dimension_numbers<[1], [0], [0], [1], [0, 0, 1, 1], [], []>} : vector<8x128xf32>, vector<128x128xf32>, vector<8x128xf32> -> vector<8x128xf32>
    %33 = arith.addf %30, %32 : vector<8x128xf32>
    %c0_17 = arith.constant 0 : index
    %c0_18 = arith.constant 0 : index
    %34 = vector.load %arg5[%c0_17, %c0_18] : memref<1x128xf32, #tpu.memory_space<vmem>>, vector<1x128xf32>
    %35 = vector.broadcast %34 : vector<1x128xf32> to vector<8x128xf32>
    %36 = arith.addf %33, %35 : vector<8x128xf32>
    %37 = math.tanh %36 : vector<8x128xf32>
    %38 = vector.shape_cast %37 : vector<8x128xf32> to vector<1x8x128xf32>
    %c0_19 = arith.constant 0 : index
    %c0_20 = arith.constant 0 : index
    %c0_21 = arith.constant 0 : index
    %39 = vector.load %arg6[%c0_19, %c0_20, %c0_21] : memref<1x8x128xf32, #tpu.memory_space<vmem>>, vector<1x8x128xf32>
    tpu.vector_store %arg6[%c0_19, %c0_20, %c0_21], %38 {strides = array<i32>} : memref<1x8x128xf32, #tpu.memory_space<vmem>>, vector<1x8x128xf32>,
    return
  }
  func.func @transform_0(%arg0: i32, %arg1: i32) -> (i32, i32, i32) {
    %c0_i32 = arith.constant 0 : i32
    %c0_i32_0 = arith.constant 0 : i32
    return %arg0, %arg1, %c0_i32 : i32, i32, i32
  }
  func.func @transform_1(%arg0: i32, %arg1: i32) -> (i32, i32, i32) {
    %c0_i32 = arith.constant 0 : i32
    %c0_i32_0 = arith.constant 0 : i32
    %c0_i32_1 = arith.constant 0 : i32
    return %arg0, %c0_i32, %c0_i32_0 : i32, i32, i32
  }
  func.func @transform_2(%arg0: i32, %arg1: i32) -> (i32, i32) {
    %c0_i32 = arith.constant 0 : i32
    %c0_i32_0 = arith.constant 0 : i32
    %c0_i32_1 = arith.constant 0 : i32
    return %c0_i32, %c0_i32_0 : i32, i32
  }
  func.func @transform_3(%arg0: i32, %arg1: i32) -> (i32, i32) {
    %c0_i32 = arith.constant 0 : i32
    %c0_i32_0 = arith.constant 0 : i32
    %c0_i32_1 = arith.constant 0 : i32
    return %c0_i32, %c0_i32_0 : i32, i32
  }
  func.func @transform_4(%arg0: i32, %arg1: i32) -> (i32, i32, i32) {
    %c0_i32 = arith.constant 0 : i32
    %c0_i32_0 = arith.constant 0 : i32
    return %arg0, %arg1, %c0_i32 : i32, i32, i32
  }
  func.func @transform_5(%arg0: i32, %arg1: i32) -> (i32, i32, i32) {
    %c0_i32 = arith.constant 0 : i32
    %c0_i32_0 = arith.constant 0 : i32
    return %arg0, %arg1, %c0_i32 : i32, i32, i32
  }
}

</mosaic_0001>

<bundles_post_ra>
// kernel: tpu_custom_call.1
= control target key start
LH: loop header
LB: loop body
LE: loop exit
PB: predicated region body
PF: predicated region fallthrough
CT: control target
= control target key end

     0   :  { %6 = vsyncpa [#allocation3], 0  ;;  %s115_s0 = inlined_call_operand.hbm [shape: f32[8,128], index: 0, kind: input, shape index: {}]   ;;  %s116_s1 = inlined_call_operand.hbm [shape: f32[8,128], index: 1, kind: output, shape index: {}]  }
   0x1   :  { %7 = vsyncpa [#allocation4], 0  ;;  %s13_s8 = sshll.u32 %s115_s0, 4  ;;  %s97_s9 = smov [#allocation2]   ;;  %s14_s8 = int_to_ptr.hbm [resolvable:$true] %s13_s8 }
   0x2   :  { %s15_s10 = sshll.u32 %s97_s9, 4  ;;  %s16_s10 = int_to_ptr.vmem [resolvable:$true] %s15_s10 }
   0x3   :  { %18 = dma.hbm_to_vmem [thread:$0]  %s14_s8, 128, %s16_s10, [#allocation3]  }
   0x4   :  { %93 = dma.done.wait [#allocation3], 128  }
   0x5   :  { %94 = vsyncadd [#allocation3], 4294967168  ;;  %s98_s11 = smov [#allocation5]   ;;  %s33_s15 = sshll.u32 %s116_s1, 4  ;;  %v23_v0 = vld [vmem:[#allocation2] sm:$0xff]  ;;  %s34_s15 = int_to_ptr.hbm [resolvable:$true] %s33_s15 }
   0x6   :  { %s31_s12 = sshll.u32 %s98_s11, 4  ;;  %v24_v1 = vadd.f32 1.0, %v23_v0  ;;  %s32_s12 = int_to_ptr.vmem [resolvable:$true] %s31_s12 }
   0x8   :  { %25 = vst [vmem:[#allocation5] sm:$0xff] %v24_v1 }
   0x9   :  { %36 = dma.vmem_to_hbm [thread:$0]  %s32_s12, 128, %s34_s15, [#allocation4]  }
   0xa   :  { %95 = dma.done.wait [#allocation4], 128  }
   0xb   :  { %96 = vsyncadd [#allocation4], 4294967168 }
   0xc   :  { %41 = vsyncpa [#allocation3], 1 }
   0xd   :  { %42 = vsyncpa [#allocation4], 1 }

// kernel: tpu_custom_call.1
= control target key start
LH: loop header
LB: loop body
LE: loop exit
PB: predicated region body
PF: predicated region fallthrough
CT: control target
= control target key end

     0   :  { %s1240_s0 = inlined_call_operand.hbm [shape: f32[2,8,128], index: 0, kind: input, shape index: {}]   ;;  %s1241_s1 = inlined_call_operand.hbm [shape: f32[2,128,128], index: 1, kind: input, shape index: {}]   ;;  %s1242_s2 = inlined_call_operand.hbm [shape: f32[256,128], index: 2, kind: input, shape index: {}]   ;;  %s1243_s3 = inlined_call_operand.vmem [shape: f32[1,128], index: 3, kind: input, shape index: {}]   ;;  %s1244_s4 = inlined_call_operand.hbm [shape: f32[2,8,128], index: 4, kind: output, shape index: {0}]   ;;  %s1245_s5 = inlined_call_operand.hbm [shape: f32[2,8,128], index: 5, kind: output, shape index: {1}]  }
   0x1   :  { %1252 = sst [smem:[#allocation21_spill]] %s1242_s2 }
   0x2   :  { %11 = vsyncpa [#allocation3], 0 }
   0x3   :  { %13 = vsyncpa [#allocation3 + $0x1], 0 }
   0x4   :  { %14 = vsyncpa [#allocation6], 0 }
   0x5   :  { %16 = vsyncpa [#allocation6 + $0x1], 0 }
   0x6   :  { %17 = vsyncpa [#allocation4], 0 }
   0x7   :  { %19 = vsyncpa [#allocation4 + $0x1], 0 }
   0x8   :  { %20 = vsyncpa [#allocation10], 0 }
   0x9   :  { %22 = vsyncpa [#allocation10 + $0x1], 0  ;;  %s1030_s18 = smov 0   ;;  %s1032_s19 = smov 0  }
   0xa   :  { %s1034_s20 = smov 0   ;;  %s1036_s21 = smov 0  }
   0xb   :  { %s1038_s22 = smov 0   ;;  %s1040_s23 = smov 0  }
   0xc LB: > { %1253 = sst [smem:[#allocation16_spill]] %s975_s18  ;;  %s1061_s24 = sadd.s32 4294967295, %s995_s23   ;;  %s995_s23 = sphi %s1040_s23, %s28_s23   ;;  %s991_s22 = sphi %s1038_s22, %s1274_s22   ;;  %s987_s21 = sphi %s1036_s21, %s1273_s21   ;;  %s983_s20 = sphi %s1034_s20, %s1269_s20   ;;  %s979_s19 = sphi %s1032_s19, %s1272_s19   ;;  %s975_s18 = sphi %s1030_s18, %s1271_s18  }
   0xd   : > { %1254 = sst [smem:[#allocation17_spill]] %s983_s20  ;;  %p670_p0 = scmp.ge.s32.totalorder %s995_s23, 1 }
   0xe   : > { %p63_p1 = scmp.eq.s32.totalorder %s1061_s24, 0  ;;  %p197_p2 = scmp.lt.s32.totalorder %s995_s23, 3 }
   0xf   : > { %s1255_s2 = sld [smem:[#allocation21_spill]]  ;;  %s997_s29 = smov [#allocation7]  }
  0x10   : > { %p1069_p3 = pnand %p670_p0, %p197_p2  ;;  %s210_s30 = sshll.u32 %s997_s29, 4  ;;  %s211_s30 = int_to_ptr.vmem [resolvable:$true] %s210_s30 }
  0x11   : > { %p672_p6 = scmp.ge.s32.totalorder %s995_s23, 2  ;;  %s1246_s6 = smov 128  }
  0x12   : > { %p703_p4 = pneg %p1069_p3  ;;  %s1247_s7 = smov 8  }
  0x13   : > { %s669_s8 = sadd.s32 4294967294, %s995_s23   ;;  %s40_s9 = sadd.s32 1, %s991_s22 }
  0x14   : > { %p704_p5 = pnand %p703_p4, %p63_p1  ;;  %s49_s10 = sadd.s32 1, %s983_s20 }
  0x15   : > { %s208_s27 = sshll.u32 %s1255_s2, 4  ;;  %p42_p7 = scmp.ge.s32.totalorder %s40_s9, 2  ;;  %s209_s27 = int_to_ptr.hbm [resolvable:$true] %s208_s27 }
  0x16   : > { %706 = dma.hbm_to_vmem [thread:$0]  (!%p704_p5), %s209_s27, 4096, %s211_s30, [#allocation6], %s1246_s6, %s1246_s6, %s1247_s7  }
  0x17   : > { %p56_p8 = scmp.ne.s32.totalorder %s983_s20, %s979_s19  ;;  %p57_p9 = scmp.eq.s32.totalorder %s995_s23, 0 }
  0x18   : > { %p62_p10 = scmp.ne.s32.totalorder %s979_s19, %s975_s18  ;;  %s1276_s9 = smov (%p42_p7, %s40_s9), 0 }
  0x19   : > { %1257 = sst [smem:[#allocation18_spill]] %s1276_s9  ;;  %p1091_p11 = por %p57_p9, %p56_p8 }
  0x1a   : > { %p1097_p12 = por %p63_p1, %p62_p10  ;;  %s44_s13 = ssub.s32 %s991_s22, %s1276_s9 }
  0x1b   : > { %p156_p13 = scmp.eq.s32.totalorder %s1061_s24, 1  ;;  %p47_p0 = scmp.eq.s32.totalorder %s44_s13, 0 }
  0x1c   : > { %p162_p2 = scmp.eq.s32.totalorder %s669_s8, 1  ;;  %p722_p5 = scmp.lt.s32.totalorder %s995_s23, 2 }
  0x1d   : > { %p1104_p4 = por %p156_p13, %p56_p8  ;;  %s227_s17 = sand.u32 1, %s983_s20  }
  0x1e   : > { %s1110_s15 = scalar_select %p47_p0, %s983_s20, %s49_s10  }
  0x1f   : > { %p1112_p7 = por %p162_p2, %p62_p10  ;;  %s673_s25 = sshll.u32 %s227_s17, 3 }
  0x20   : > { %1261 = sst [smem:[#allocation19_spill]] %s1110_s15  ;;  %s674_s26 = sshll.u32 %s991_s22, 3 }
  0x21   : > { %s1262_s16 = scalar_select %p1112_p7, 1, 0 }
  0x22   : > { %s236_s30 = scalar_lea.hbm %s1240_s0, %s674_s26  ;;  %s231_s8 = scalar_lea.vmem [#allocation2], %s673_s25 }
  0x23   : > { %1263 = sst [smem:[#allocation20_spill]] %s1262_s16  ;;  %s240_s13 = sshll.u32 %s231_s8, 4  ;;  %s241_s13 = int_to_ptr.vmem [resolvable:$true] %s240_s13 }
  0x24   : > { %s238_s6 = sshll.u32 %s236_s30, 4  ;;  %p708_p8 = pnand %p722_p5, %p1091_p11  ;;  %s239_s6 = int_to_ptr.hbm [resolvable:$true] %s238_s6 }
  0x25   : > { %s675_s10 = sshll.u32 %s227_s17, 7  ;;  %s690_s7 = sshll.u32 %s991_s22, 7 }
  0x26   : > { %s228_s2 = scalar_lea.sflag [#allocation3], %s227_s17  ;;  %s251_s9 = scalar_lea.vmem [#allocation5], %s675_s10 }
  0x27   : > { %710 = dma.hbm_to_vmem [thread:$0]  (!%p708_p8), %s239_s6, 128, %s241_s13, %s228_s2  }
  0x28   : > { %s259_s15 = sshll.u32 %s251_s9, 4  ;;  %s247_s20 = sand.u32 1, %s995_s23   ;;  %s260_s15 = int_to_ptr.vmem [resolvable:$true] %s259_s15 }
  0x29   : > { %s256_s27 = scalar_lea.hbm %s1241_s1, %s690_s7  ;;  %s248_s25 = scalar_lea.sflag [#allocation6], %s247_s20 }
  0x2a   : > { %s257_s26 = sshll.u32 %s256_s27, 4  ;;  %s1264_s29 = smov 8   ;;  %s258_s26 = int_to_ptr.hbm [resolvable:$true] %s257_s26 }
  0x2b   : > { %s1265_s30 = smov 128   ;;  %271 = sbr.rel (%p1069_p3) target bundleno = 775 (0x307), region = 36 }
  0x2c   : > { %713 = dma.hbm_to_vmem [thread:$0]  (!%p708_p8), %s258_s26, 2048, %s260_s15, %s248_s25, %s1265_s30, %s1265_s30, %s1264_s29  }
  0x2d   : > { %s1134_s2 = sand.u32 (!%p1069_p3), 1, %s979_s19  }
  0x2e   : > { %s1137_s6 = sshll.u32 (!%p1069_p3), %s1134_s2, 3  ;;  %s274_s18 = scalar_lea.sflag (!%p1069_p3), [#allocation3], %s1134_s2 }
  0x2f   : > { %s277_s7 = scalar_lea.vmem (!%p1069_p3), [#allocation2], %s1137_s6 }
  0x30   : > { %954 = dma.done.wait (%p1097_p12), %s274_s18, 128  }
  0x31   : > { %956 = vsyncadd (%p1097_p12), %s274_s18, 4294967168  ;;  %s283_s20 = sand.u32 1, %s1061_s24   ;;  %s680_s28 = sshll.u32 %s1134_s2, 7 }
  0x32   : > { %s284_s9 = scalar_lea.sflag [#allocation6], %s283_s20  ;;  %s1147_s11 = scalar_lea.vmem [#allocation5], %s680_s28 }
  0x33   : > { %958 = dma.done.wait (%p1097_p12), %s284_s9, 2048  }
  0x34   : > { %960 = vsyncadd (%p1097_p12), %s284_s9, 4294965248 }
  0x35   : > { %962 = dma.done.wait (%p63_p1), [#allocation6], 4096  }
  0x36   : > { %964 = vsyncadd (%p63_p1), [#allocation6], 4294963200  ;;  %v346_v0 = vld [vmem:[%s1147_s11 + $0x78] sm:$0xff]  ;;  %v345_v1 = vld [vmem:[%s1147_s11 + $0x70] sm:$0xff]  ;;  %v367_v17 = vlaneseq  ;;  %s329_s24 = scalar_lea.vmem [#allocation9], %s1137_s6  ;;  %s686_s12 = sshll.u32 %s987_s21, 3 }
  0x37   : > { %347 = vmatpush.xpose.msra.mxu0 %v346_v0  ;;  %386 = vmatpush.msra.mxu1 %v346_v0  ;;  %v344_v2 = vld [vmem:[%s1147_s11 + $0x68] sm:$0xff]  ;;  %v343_v3 = vld [vmem:[%s1147_s11 + $0x60] sm:$0xff]  ;;  %v342_v4 = vld [vmem:[%s1147_s11 + $0x58] sm:$0xff]  ;;  %s517_s17 = scalar_lea.hbm %s1245_s5, %s686_s12  ;;  %s519_s8 = sshll.u32 %s329_s24, 4  ;;  %s520_s8 = int_to_ptr.vmem [resolvable:$true] %s519_s8 }
  0x38   : > { %v341_v5 = vld [vmem:[%s1147_s11 + $0x50] sm:$0xff]  ;;  %v340_v6 = vld [vmem:[%s1147_s11 + $0x48] sm:$0xff]  ;;  %v339_v7 = vld [vmem:[%s1147_s11 + $0x40] sm:$0xff]  ;;  %v368_v18 = vand.u32 127, %v367_v17  ;;  %s521_s13 = sshll.u32 %s517_s17, 4  ;;  %s491_s10 = scalar_lea.sflag [#allocation10], %s1134_s2  ;;  %s522_s13 = int_to_ptr.hbm [resolvable:$true] %s521_s13 }
  0x39   : > { %387 = vmatpush.msra.mxu1 %v345_v1  ;;  %v338_v8 = vld [vmem:[%s1147_s11 + $0x38] sm:$0xff]  ;;  %v337_v9 = vld [vmem:[%s1147_s11 + $0x30] sm:$0xff]  ;;  %v336_v10 = vld [vmem:[%s1147_s11 + $0x28] sm:$0xff]  ;;  %s887_s27 = sshra.s32 %s522_s13, 4  ;;  %s893_s21 = scalar_lea.hbm %s1245_s5, 16  ;;  %s888_s27 = int_to_ptr.hbm [resolvable:$true] %s887_s27 }
  0x3a   : > { %v335_v11 = vld [vmem:[%s1147_s11 + $0x20] sm:$0xff]  ;;  %v334_v12 = vld [vmem:[%s1147_s11 + $0x18] sm:$0xff]  ;;  %v333_v13 = vld [vmem:[%s1147_s11 + $0x10] sm:$0xff]  ;;  %vm369_vm0 = vcmp.lt.s32.totalorder %v368_v18, 8  ;;  %s889_s26 = scalar_lea.hbm %s888_s27, 8  ;;  %p894_p10 = scmp.lt.s32.totalorder %s888_s27, %s1245_s5 }
  0x3b   : > { %348 = vmatpush.xpose.msra.mxu0 %v345_v1  ;;  %388 = vmatpush.msra.mxu1 %v344_v2  ;;  %v332_v14 = vld [vmem:[%s1147_s11 + $0x8] sm:$0xff]  ;;  %v331_v15 = vld [vmem:[%s1147_s11] sm:$0xff]  ;;  %v1175_v16 = vld [vmem:[%s277_s7] sm:$0xff]  ;;  %p890_p1 = scmp.ne.s32.totalorder %s888_s27, %s889_s26  ;;  %p895_p11 = scmp.lt.s32.totalorder %s893_s21, %s889_s26 }
  0x3c   : > { %v437_v25 = vld [vmem:[#allocation7 + $0xf8] sm:$0xff]  ;;  %v436_v27 = vld [vmem:[#allocation7 + $0xf0] sm:$0xff]  ;;  %v435_v29 = vld [vmem:[#allocation7 + $0xe8] sm:$0xff] }
  0x3d   : > { %389 = vmatpush.msra.mxu1 %v343_v3  ;;  %v421_v26 = vld [vmem:[#allocation7 + $0x78] sm:$0xff]  ;;  %438 = vmatpush.msra.mxu2 %v437_v25  ;;  %v420_v28 = vld [vmem:[#allocation7 + $0x70] sm:$0xff]  ;;  %v419_v30 = vld [vmem:[#allocation7 + $0x68] sm:$0xff]  ;;  %p891_p3 = pnand %p890_p1, %p1104_p4  ;;  %p896_p12 = por %p895_p11, %p894_p10 }
  0x3e   : > { %458 = vmatpush.msra.mxu3 %v421_v26  ;;  %v434_v31 = vld [vmem:[#allocation7 + $0xe0] sm:$0xff]  ;;  %v433_v33 = vld [vmem:[#allocation7 + $0xd8] sm:$0xff]  ;;  %v432_v35 = vld [vmem:[#allocation7 + $0xd0] sm:$0xff] }
  0x3f   : > { %349 = vmatpush.xpose.msra.mxu0 %v344_v2  ;;  %390 = vmatpush.msra.mxu1 %v342_v4  ;;  %v418_v32 = vld [vmem:[#allocation7 + $0x60] sm:$0xff]  ;;  %v417_v34 = vld [vmem:[#allocation7 + $0x58] sm:$0xff]  ;;  %v416_v36 = vld [vmem:[#allocation7 + $0x50] sm:$0xff]  ;;  %p892_p9 = pneg %p891_p3 }
  0x40   : > { %439 = vmatpush.msra.mxu2 %v436_v27  ;;  %459 = vmatpush.msra.mxu3 %v420_v28  ;;  %v431_v37 = vld [vmem:[#allocation7 + $0xc8] sm:$0xff]  ;;  %v430_v39 = vld [vmem:[#allocation7 + $0xc0] sm:$0xff]  ;;  %v429_v41 = vld [vmem:[#allocation7 + $0xb8] sm:$0xff] }
  0x41   : > { %391 = vmatpush.msra.mxu1 %v341_v5  ;;  %v415_v38 = vld [vmem:[#allocation7 + $0x48] sm:$0xff]  ;;  %v414_v40 = vld [vmem:[#allocation7 + $0x40] sm:$0xff]  ;;  %v413_v42 = vld [vmem:[#allocation7 + $0x38] sm:$0xff]  ;;  %p897_p13 = pnand %p896_p12, %p892_p9 }
  0x42   : > { %440 = vmatpush.msra.mxu2 %v435_v29  ;;  %460 = vmatpush.msra.mxu3 %v419_v30  ;;  %v428_v44 = vld [vmem:[#allocation7 + $0xb0] sm:$0xff]  ;;  %v427_v46 = vld [vmem:[#allocation7 + $0xa8] sm:$0xff]  ;;  %v426_v48 = vld [vmem:[#allocation7 + $0xa0] sm:$0xff] }
  0x43   : > { %350 = vmatpush.xpose.msra.mxu0 %v343_v3  ;;  %392 = vmatpush.msra.mxu1 %v340_v6  ;;  %v412_v45 = vld [vmem:[#allocation7 + $0x30] sm:$0xff]  ;;  %v411_v47 = vld [vmem:[#allocation7 + $0x28] sm:$0xff]  ;;  %v410_v49 = vld [vmem:[#allocation7 + $0x20] sm:$0xff] }
  0x44   : > { %441 = vmatpush.msra.mxu2 %v434_v31  ;;  %461 = vmatpush.msra.mxu3 %v418_v32  ;;  %v425_v50 = vld [vmem:[#allocation7 + $0x98] sm:$0xff]  ;;  %v424_v54 = vld [vmem:[#allocation7 + $0x90] sm:$0xff]  ;;  %v423_v57 = vld [vmem:[#allocation7 + $0x88] sm:$0xff] }
  0x45   : > { %393 = vmatpush.msra.mxu1 %v339_v7  ;;  %v409_v51 = vld [vmem:[#allocation7 + $0x18] sm:$0xff]  ;;  %v408_v55 = vld [vmem:[#allocation7 + $0x10] sm:$0xff]  ;;  %v407_v58 = vld [vmem:[#allocation7 + $0x8] sm:$0xff] }
  0x46   : > { %442 = vmatpush.msra.mxu2 %v433_v33  ;;  %462 = vmatpush.msra.mxu3 %v417_v34  ;;  %v422_v61 = vld [vmem:[#allocation7 + $0x80] sm:$0xff] }
  0x47   : > { %351 = vmatpush.xpose.msra.mxu0 %v342_v4  ;;  %394 = vmatpush.msra.mxu1 %v338_v8  ;;  %v406_v62 = vld [vmem:[#allocation7] sm:$0xff] }
  0x48   : > { %443 = vmatpush.msra.mxu2 %v432_v35  ;;  %463 = vmatpush.msra.mxu3 %v416_v36 }
  0x49   : > { %395 = vmatpush.msra.mxu1 %v337_v9 }
  0x4a   : > { %444 = vmatpush.msra.mxu2 %v431_v37  ;;  %464 = vmatpush.msra.mxu3 %v415_v38 }
  0x4b   : > { %352 = vmatpush.xpose.msra.mxu0 %v341_v5  ;;  %396 = vmatpush.msra.mxu1 %v336_v10 }
  0x4c   : > { %445 = vmatpush.msra.mxu2 %v430_v39  ;;  %465 = vmatpush.msra.mxu3 %v414_v40 }
  0x4d   : > { %397 = vmatpush.msra.mxu1 %v335_v11 }
  0x4e   : > { %446 = vmatpush.msra.mxu2 %v429_v41  ;;  %466 = vmatpush.msra.mxu3 %v413_v42 }
  0x4f   : > { %353 = vmatpush.xpose.msra.mxu0 %v340_v6  ;;  %398 = vmatpush.msra.mxu1 %v334_v12 }
  0x50   : > { %447 = vmatpush.msra.mxu2 %v428_v44  ;;  %467 = vmatpush.msra.mxu3 %v412_v45 }
  0x51   : > { %399 = vmatpush.msra.mxu1 %v333_v13 }
  0x52   : > { %448 = vmatpush.msra.mxu2 %v427_v46  ;;  %468 = vmatpush.msra.mxu3 %v411_v47 }
  0x53   : > { %354 = vmatpush.xpose.msra.mxu0 %v339_v7  ;;  %400 = vmatpush.msra.mxu1 %v332_v14 }
  0x54   : > { %449 = vmatpush.msra.mxu2 %v426_v48  ;;  %469 = vmatpush.msra.mxu3 %v410_v49 }
  0x55   : > { %401 = vmatpush.msra.mxu1 %v331_v15 }
  0x56   : > { %450 = vmatpush.msra.mxu2 %v425_v50  ;;  %470 = vmatpush.msra.mxu3 %v409_v51 }
  0x57   : > { %355 = vmatpush.xpose.msra.mxu0 %v338_v8 }
  0x58   : > { %451 = vmatpush.msra.mxu2 %v424_v54  ;;  %471 = vmatpush.msra.mxu3 %v408_v55 }
  0x5a   : > { %452 = vmatpush.msra.mxu2 %v423_v57  ;;  %472 = vmatpush.msra.mxu3 %v407_v58 }
  0x5b   : > { %356 = vmatpush.xpose.msra.mxu0 %v337_v9 }
  0x5c   : > { %453 = vmatpush.msra.mxu2 %v422_v61  ;;  %473 = vmatpush.msra.mxu3 %v406_v62 }
  0x5d   : > { %454 = vmatmul.f32.vlgmr.msra.gmra.mxu2 %v1175_v16 }
  0x5f   : > { %357 = vmatpush.xpose.msra.mxu0 %v336_v10 }
  0x63   : > { %358 = vmatpush.xpose.msra.mxu0 %v335_v11 }
  0x67   : > { %359 = vmatpush.xpose.msra.mxu0 %v334_v12 }
  0x6b   : > { %360 = vmatpush.xpose.msra.mxu0 %v333_v13 }
  0x6f   : > { %361 = vmatpush.xpose.msra.mxu0 %v332_v14 }
  0x73   : > { %362 = vmatpush.xpose.msra.mxu0 %v331_v15 }
  0x76   : > { %363 = vmatmul.f32.vlgmr.msra.gmra.mxu0 %v1175_v16 }
  0xf3   : > { %v364_v19 = vpop.f32.mrf.mxu0 }
  0xf4   : > { %v372_v20 = vsel %vm369_vm0, %v364_v19, -inf }
  0xf5   : > { %373 = vmax.xlane.f32.xlu0 %v372_v20 }
 0x168   : > { %v374_v21 = vpop.xlane.xlu0 %373 }
 0x169   : > { %v375_v22 = vsub.f32 %v372_v20, %v374_v21 }
 0x16b   : > { %v376_v23 = vmul.f32 1.442695, %v375_v22 }
 0x16d   : > { %777 = vpow2.f32 %v376_v23 }
 0x173   : > { %v1178_v24 = vpop.eup %777 }
 0x174   : > { %378 = vadd.xlane.f32.xlu0 %v1178_v24 }
 0x1e7   : > { %v379_v43 = vpop.xlane.xlu0 %378 }
 0x1e8   : > { %779 = vrcp.f32 %v379_v43 }
 0x1ee   : > { %v780_v52 = vpop.eup %779 }
 0x1ef   : > { %v381_v53 = vmul.f32 %v780_v52, %v379_v43 }
 0x1f1   : > { %v382_v56 = vsub.f32 2.0, %v381_v53 }
 0x1f3   : > { %v383_v59 = vmul.f32 %v780_v52, %v382_v56 }
 0x1f5   : > { %v384_v60 = vmul.f32 %v1178_v24, %v383_v59 }
 0x1f7   : > { %402 = vmatmul.f32.vlgmr.msra.gmra.mxu1 %v384_v60  ;;  %385 = vst [vmem:[%s329_s24] sm:$0xff] %v384_v60 }
 0x274   : > { %v403_v63 = vpop.f32.mrf.mxu1 }
 0x275   : > { %474 = vmatmul.f32.vlgmr.msra.gmra.mxu3 %v403_v63 }
 0x276   : > { %900 = shalt.err (!%p897_p13)
}
 0x277   : > { %700 = dma.vmem_to_hbm [thread:$0]  (%p1104_p4), %s520_s8, 128, %s522_s13, %s491_s10   ;;  %v455_v0 = vpop.f32.mrf.mxu2  ;;  %v776_v1 = vld [vmem:[%s1243_s3] ss:$0 sm:$0xff] }
 0x278   : > { %s502_s11 = scalar_lea.hbm %s1244_s4, %s686_s12  ;;  %s322_s24 = scalar_lea.vmem [#allocation8], %s1137_s6 }
 0x279   : > { %s504_s15 = sshll.u32 %s322_s24, 4  ;;  %s506_s16 = sshll.u32 %s502_s11, 4  ;;  %s505_s15 = int_to_ptr.vmem [resolvable:$true] %s504_s15  ;;  %s507_s16 = int_to_ptr.hbm [resolvable:$true] %s506_s16 }
 0x27a   : > { %s486_s17 = scalar_lea.sflag [#allocation4], %s1134_s2  ;;  %s915_s8 = sshra.s32 %s507_s16, 4  ;;  %s916_s8 = int_to_ptr.hbm [resolvable:$true] %s915_s8 }
 0x27b   : > { %s917_s13 = scalar_lea.hbm %s916_s8, 8  ;;  %s921_s12 = scalar_lea.hbm %s1244_s4, 16 }
 0x27c   : > { %p918_p0 = scmp.ne.s32.totalorder %s916_s8, %s917_s13  ;;  %p922_p8 = scmp.lt.s32.totalorder %s916_s8, %s1244_s4 }
 0x27d   : > { %p923_p1 = scmp.lt.s32.totalorder %s921_s12, %s917_s13 }
 0x27e   : > { %p919_p2 = pnand %p918_p0, %p1104_p4 }
 0x27f   : > { %p924_p3 = por %p923_p1, %p922_p8 }
 0x280   : > { %p920_p5 = pneg %p919_p2 }
 0x282   : > { %p925_p9 = pnand %p924_p3, %p920_p5 }
 0x2f8   : > { %v475_v2 = vpop.f32.mrf.mxu3 }
 0x2f9   : > { %v476_v3 = vadd.f32 %v475_v2, %v455_v0 }
 0x2fb   : > { %v482_v4 = vadd.f32 %v776_v1, %v476_v3 }
 0x2fd   : > { %781 = vtanh.f32 %v482_v4 }
 0x303   : > { %v782_v5 = vpop.eup %781 }
 0x304   : > { %484 = vst [vmem:[%s322_s24] sm:$0xff] %v782_v5 }
 0x305   : > { %928 = shalt.err (!%p925_p9)
}
 0x306   : > { %699 = dma.vmem_to_hbm [thread:$0]  (%p1104_p4), %s505_s15, 128, %s507_s16, %s486_s17  }
 0x307 PF: > { %s1266_s2 = sld [smem:[#allocation16_spill]]  ;;  %p715_p10 = pnand %p672_p6, %p1112_p7 }
 0x309   : > { %p716_p11 = pneg %p715_p10 }
 0x30d   : > { %s533_s29 = sand.u32 1, %s1266_s2  }
 0x30e   : > { %s534_s21 = scalar_lea.sflag [#allocation4], %s533_s29 }
 0x30f   : > { %966 = dma.done.wait (%p716_p11), %s534_s21, 128  }
 0x310   : > { %968 = vsyncadd (%p716_p11), %s534_s21, 4294967168  ;;  %s544_s30 = scalar_lea.sflag [#allocation10], %s533_s29 }
 0x311   : > { %970 = dma.done.wait (%p716_p11), %s544_s30, 128  }
 0x312   : > { %972 = vsyncadd (%p716_p11), %s544_s30, 4294967168  ;;  %s28_s23 = sadd.s32 1, %s995_s23   ;;  %s1268_s14 = sld [smem:[#allocation17_spill]] }
 0x313   : > { %p25_p12 = scmp.ge.s32.totalorder %s28_s23, 4   ;;  %s1269_s20 = sld [smem:[#allocation19_spill]] }
 0x314   : > { %s1270_s7 = sld [smem:[#allocation18_spill]]  ;;  %s1271_s18 = smov %s979_s19 }
 0x315   : > { %s1273_s21 = smov %s991_s22 }
 0x316   :  { %27 = sbr.rel (!%p25_p12) target bundleno = 12 (0xc), region = 115 }
 0x318   : > { %s1272_s19 = smov %s1268_s14 }
 0x31a   : > { %s1274_s22 = smov %s1270_s7 }
 0x31b   :  { %550 = vsyncpa [#allocation3], 1 }
 0x31c   :  { %552 = vsyncpa [#allocation3 + $0x1], 1 }
 0x31d   :  { %553 = vsyncpa [#allocation6], 1 }
 0x31e   :  { %555 = vsyncpa [#allocation6 + $0x1], 1 }
 0x31f   :  { %556 = vsyncpa [#allocation4], 1 }
 0x320   :  { %558 = vsyncpa [#allocation4 + $0x1], 1 }
 0x321   :  { %559 = vsyncpa [#allocation10], 1 }
 0x322   :  { %561 = vsyncpa [#allocation10 + $0x1], 1 }

</bundles_post_ra>
